<compile_context>
chip_gen: v5e
topology: v5e:2x2
jax: 0.10.0
libtpu: 0.0.40
codegen_flags: <defaults>
</compile_context>

<pallas_src>
import numpy as np
import jax
import jax.numpy as jnp
from jax import lax
from jax.experimental import pallas as pl
from jax.experimental.pallas import tpu as pltpu

_SUBLANES = 8  # f32 sublane count: batch padding / slab alignment unit


def _round_up(n, m):
    return ((n + m - 1) // m) * m


# ----------------------------------------------------------------------------
# Kernel: one batch-group of PAD_B sequences per grid step.
#   slab_a (width H): [ emb (cols padded to H) | W_ih as (H,H) | W_hh | b_rnn ]
#   slab_b (width V): [ W_fc | b_fc ]
#   perm:  static (PAD_B*S, S*PAD_B) row-permutation (time-major -> batch-major)
# Weights are stored pre-transposed relative to PyTorch (row-vector matmuls);
# b_rnn = b_ih + b_hh (mathematically identical fold).
# ----------------------------------------------------------------------------
def _make_rnn_kernel(S, PAD_B, V, I, H):
    EMB_ROWS = _round_up(V, _SUBLANES)
    H_ROWS = _round_up(H, _SUBLANES)
    OFF_WIH = EMB_ROWS
    OFF_WHH = EMB_ROWS + H_ROWS
    OFF_BRNN = EMB_ROWS + 2 * H_ROWS
    OFF_BFC = H_ROWS  # inside slab B

    def kernel(ids_ref, wa_ref, wb_ref, perm_ref, out_ref):
        # ---- Hoisted out of the recurrence: fused embedding + input proj.
        #   emb_proj[v] = emb[v] @ W_ih + (b_ih + b_hh)        -> (EMB_ROWS, H)
        emb_p = wa_ref[0:EMB_ROWS, :]                 # emb, zero-padded
        w_ih = wa_ref[OFF_WIH:OFF_WIH + H, :]         # (H, H); rows >= I are 0
        b_rnn = wa_ref[OFF_BRNN:OFF_BRNN + 1, :]      # (1, H)
        emb_proj = (
            jnp.dot(emb_p, w_ih, preferred_element_type=jnp.float32) + b_rnn
        )

        # One-hot "gather": x_proj row t*PAD_B + b == emb_proj[ids[b, t]].
        # Padded batch rows carry id -1 -> all-zero one-hot row -> x_t == 0.
        ids = ids_ref[...]                                        # (S*PAD_B, 1)
        iota_v = lax.broadcasted_iota(jnp.int32, (S * PAD_B, EMB_ROWS), 1)
        one_hot = (ids == iota_v).astype(jnp.float32)
        x_proj = jnp.dot(one_hot, emb_proj,
                         preferred_element_type=jnp.float32)     # (S*PAD_B, H)

        # ---- Serial recurrence, fully unrolled (S small & static). Hidden
        # states stay register-resident; every x_t slice is an aligned
        # PAD_B-row (== 8 sublane) slab, so the loop body is just one small
        # MXU matmul + one EUP tanh per step.
        w_hh = wa_ref[OFF_WHH:OFF_WHH + H, :]         # (H, H)
        h = jnp.zeros((PAD_B, H), jnp.float32)        # h_0 = 0
        hs = []
        for t in range(S):
            x_t = x_proj[t * PAD_B:(t + 1) * PAD_B, :]            # (PAD_B, H)
            h = jnp.tanh(
                x_t + jnp.dot(h, w_hh, preferred_element_type=jnp.float32))
            hs.append(h)

        # ---- Time-major stack (sublane concat), then batch-major reorder as a
        # one-hot permutation matmul on the MXU (avoids XLU relayout), then one
        # FC matmul + a single full-block store already in x.view(-1, V) order.
        hs_tm = jnp.concatenate(hs, axis=0)                       # (S*PAD_B, H)
        hs_bm = jnp.dot(perm_ref[...], hs_tm,
                        preferred_element_type=jnp.float32)       # (PAD_B*S, H)
        w_fc = wb_ref[0:H, :]                                     # (H, V)
        b_fc = wb_ref[OFF_BFC:OFF_BFC + 1, :]                     # (1, V)
        out_ref[...] = (
            jnp.dot(hs_bm, w_fc, preferred_element_type=jnp.float32) + b_fc
        )

    return kernel


def _pack_params(params):
    """Pack all weights/biases into two sublane-aligned slabs (2 DMAs)."""
    emb = params["embedding"].astype(jnp.float32)   # (V, I)
    w_ih = params["w_ih"].astype(jnp.float32)       # (I, H) == weight_ih_l0.T
    w_hh = params["w_hh"].astype(jnp.float32)       # (H, H) == weight_hh_l0.T
    b_rnn = params["b_rnn"].astype(jnp.float32)     # (1, H) == b_ih + b_hh
    w_fc = params["w_fc"].astype(jnp.float32)       # (H, V) == fc.weight.T
    b_fc = params["b_fc"].astype(jnp.float32)       # (1, V)

    V, I = emb.shape
    H = w_hh.shape[0]
    assert I <= H, "packing assumes input_size <= hidden_size"
    EMB_ROWS = _round_up(V, _SUBLANES)
    H_ROWS = _round_up(H, _SUBLANES)

    # Slab A (width H). Zero-padded emb columns meet zero-padded W_ih rows, so
    # emb_pad @ W_ih_pad == emb @ W_ih exactly.
    emb_sec = jnp.zeros((EMB_ROWS, H), jnp.float32).at[:V, :I].set(emb)
    wih_sec = jnp.zeros((H_ROWS, H), jnp.float32).at[:I, :].set(w_ih)
    whh_sec = jnp.zeros((H_ROWS, H), jnp.float32).at[:H, :].set(w_hh)
    brnn_sec = jnp.zeros((_SUBLANES, H), jnp.float32).at[0:1, :].set(b_rnn)
    slab_a = jnp.concatenate([emb_sec, wih_sec, whh_sec, brnn_sec], axis=0)

    # Slab B (width V).
    wfc_sec = jnp.zeros((H_ROWS, V), jnp.float32).at[:H, :].set(w_fc)
    bfc_sec = jnp.zeros((_SUBLANES, V), jnp.float32).at[0:1, :].set(b_fc)
    slab_b = jnp.concatenate([wfc_sec, bfc_sec], axis=0)

    return slab_a, slab_b, (V, I, H)


def net_forward(token_ids, params):
    """Forward pass matching PyTorch Net.forward.

    token_ids: (batch, seq) int32
    returns:   (batch * seq, vocab_size) float32
    """
    B, S = token_ids.shape
    slab_a, slab_b, (V, I, H) = _pack_params(params)
    RA, RB = slab_a.shape[0], slab_b.shape[0]

    PAD_B = _SUBLANES
    G = _round_up(B, PAD_B) // PAD_B      # one batch-group of 8 per grid step
    Bp = G * PAD_B

    # Pad the batch to a sublane multiple with id -1 (matches nothing in the
    # one-hot, so padded hidden rows stay exactly 0) and lay the (tiny, int32)
    # ids out time-major within each group: row t*PAD_B + b_local.
    ids_p = jnp.full((Bp, S), -1, jnp.int32).at[:B, :].set(
        token_ids.astype(jnp.int32))
    ids_tm = (ids_p.reshape(G, PAD_B, S)
                   .transpose(0, 2, 1)
                   .reshape(G * S * PAD_B, 1))

    # Static row-permutation matrix: batch-major row b*S + t pulls time-major
    # row t*PAD_B + b. Applied in-kernel on the MXU.
    rows = np.arange(PAD_B * S)
    perm_np = np.zeros((PAD_B * S, S * PAD_B), np.float32)
    perm_np[rows, (rows % S) * PAD_B + rows // S] = 1.0
    perm = jnp.asarray(perm_np)

    logits_p = pl.pallas_call(
        _make_rnn_kernel(S, PAD_B, V, I, H),
        out_shape=jax.ShapeDtypeStruct((Bp * S, V), jnp.float32),
        grid_spec=pltpu.PrefetchScalarGridSpec(
            num_scalar_prefetch=0,
            grid=(G,),
            in_specs=[
                pl.BlockSpec((S * PAD_B, 1), lambda g: (g, 0)),          # ids
                pl.BlockSpec((RA, H), lambda g: (0, 0)),                 # slab A
                pl.BlockSpec((RB, V), lambda g: (0, 0)),                 # slab B
                pl.BlockSpec((PAD_B * S, S * PAD_B), lambda g: (0, 0)),  # perm
            ],
            out_specs=pl.BlockSpec((PAD_B * S, V), lambda g: (g, 0)),
        ),
        compiler_params=pltpu.CompilerParams(
            dimension_semantics=("parallel",)),  # groups shard across TCs (v7x)
    )(ids_tm, slab_a, slab_b, perm)

    # Group g, local row b_local*S + t lands at global row (g*PAD_B+b_local)*S+t
    # == b*S + t, so rows [0, B*S) are already exactly x.view(-1, V).
    return logits_p[:B * S, :]


# ----------------------------------------------------------------------------
# Pure-JAX reference (mirrors the PyTorch math) for correctness checking.
# ----------------------------------------------------------------------------
def net_forward_ref(token_ids, params):
    emb = params["embedding"]
    x = jnp.take(emb, token_ids, axis=0)          # (B, S, I)
    B, S, _ = x.shape
    H = params["w_hh"].shape[0]

    def step(h, x_t):
        h_new = jnp.tanh(x_t @ params["w_ih"] + h @ params["w_hh"]
                         + params["b_rnn"])
        return h_new, h_new

    h0 = jnp.zeros((B, H), jnp.float32)
    _, hs = lax.scan(step, h0, jnp.transpose(x, (1, 0, 2)))   # (S, B, H)
    hs = jnp.transpose(hs, (1, 0, 2))                          # (B, S, H)
    logits = hs @ params["w_fc"] + params["b_fc"]
    return logits.reshape(B * S, -1)


# ----------------------------------------------------------------------------
# Deterministic parameter init (same shapes as the PyTorch module).
# ----------------------------------------------------------------------------
def init_params(key, vocab_size, input_size, hidden_size):
    ks = jax.random.split(key, 6)
    k_h = 1.0 / jnp.sqrt(hidden_size)
    return {
        # nn.Embedding: N(0, 1), shape (V, I)
        "embedding": jax.random.normal(ks[0], (vocab_size, input_size),
                                       jnp.float32),
        # nn.RNN weights, stored transposed for row-vector matmul
        "w_ih": jax.random.uniform(ks[1], (input_size, hidden_size),
                                   jnp.float32, -k_h, k_h),
        "w_hh": jax.random.uniform(ks[2], (hidden_size, hidden_size),
                                   jnp.float32, -k_h, k_h),
        # b_ih + b_hh folded into one bias (mathematically identical)
        "b_rnn": jax.random.uniform(ks[3], (1, hidden_size),
                                    jnp.float32, -k_h, k_h),
        # nn.Linear(hidden, vocab), stored transposed
        "w_fc": jax.random.uniform(ks[4], (hidden_size, vocab_size),
                                   jnp.float32, -k_h, k_h),
        "b_fc": jax.random.uniform(ks[5], (1, vocab_size),
                                   jnp.float32, -k_h, k_h),
    }


if __name__ == "__main__":
    # Shapes implied by the original script:
    sentence = "Repeat is the best medicine for memory".split()
    vocab_size = len(set(sentence))     # 7
    input_size = 5
    hidden_size = 20

    batch = 2
    seq = 8

    key = jax.random.PRNGKey(0)
    k_params, k_tokens = jax.random.split(key)

    params = init_params(k_params, vocab_size, input_size, hidden_size)
    token_ids = jax.random.randint(k_tokens, (batch, seq), 0, vocab_size,
                                   dtype=jnp.int32)

    out = jax.block_until_ready(net_forward(token_ids, params))
    ref = net_forward_ref(token_ids, params)

    assert out.shape == (batch * seq, vocab_size), out.shape
    assert jnp.allclose(out, ref, atol=1e-4, rtol=1e-4), "mismatch vs reference"

    print("KERNEL_OK")
</pallas_src>

<mosaic_0001>
module attributes {stable_mosaic.version = 11 : i64} {
  func.func @kernel(%arg0: i32, %arg1: memref<64x1xi32, #tpu.memory_space<vmem>>, %arg2: memref<64x20xf32, #tpu.memory_space<vmem>>, %arg3: memref<32x7xf32, #tpu.memory_space<vmem>>, %arg4: memref<64x64xf32, #tpu.memory_space<vmem>>, %arg5: memref<64x7xf32, #tpu.memory_space<vmem>>) attributes {dimension_semantics = [#tpu.dimension_semantics<parallel>], iteration_bounds = array<i64: 1>, scalar_prefetch = 0 : i64, scratch_operands = 0 : i64, tpu.core_type = #tpu.core_type<tc>, window_params = [{transform_indices = @transform_0, window_bounds = array<i64: 64, 1>}, {pipeline_mode = #tpu.pipeline_mode<synchronous>, transform_indices = @transform_1, window_bounds = array<i64: 64, 20>}, {pipeline_mode = #tpu.pipeline_mode<synchronous>, transform_indices = @transform_2, window_bounds = array<i64: 32, 7>}, {pipeline_mode = #tpu.pipeline_mode<synchronous>, transform_indices = @transform_3, window_bounds = array<i64: 64, 64>}, {transform_indices = @transform_4, window_bounds = array<i64: 64, 7>}]} {
    %c0 = arith.constant 0 : index
    %c0_0 = arith.constant 0 : index
    %0 = vector.load %arg2[%c0, %c0_0] : memref<64x20xf32, #tpu.memory_space<vmem>>, vector<8x20xf32>
    %c8 = arith.constant 8 : index
    %c0_1 = arith.constant 0 : index
    %1 = vector.load %arg2[%c8, %c0_1] : memref<64x20xf32, #tpu.memory_space<vmem>>, vector<20x20xf32>
    %c56 = arith.constant 56 : index
    %c0_2 = arith.constant 0 : index
    %2 = vector.load %arg2[%c56, %c0_2] : memref<64x20xf32, #tpu.memory_space<vmem>>, vector<1x20xf32>
    %cst = arith.constant dense<0.000000e+00> : vector<8x20xf32>
    %3 = tpu.matmul %0, %1, %cst {dimension_numbers = #tpu.dot_dimension_numbers<[1], [0], [0], [1], [0, 0, 1, 1], [], []>} : vector<8x20xf32>, vector<20x20xf32>, vector<8x20xf32> -> vector<8x20xf32>
    %4 = vector.broadcast %2 : vector<1x20xf32> to vector<8x20xf32>
    %5 = arith.addf %3, %4 : vector<8x20xf32>
    %c0_3 = arith.constant 0 : index
    %c0_4 = arith.constant 0 : index
    %6 = vector.load %arg1[%c0_3, %c0_4] : memref<64x1xi32, #tpu.memory_space<vmem>>, vector<64x1xi32>
    %7 = tpu.iota {dimensions = array<i32: 1>} : vector<64x8xi32>
    %8 = vector.broadcast %6 : vector<64x1xi32> to vector<64x8xi32>
    %9 = arith.cmpi eq, %8, %7 : vector<64x8xi32>
    %10 = arith.extui %9 : vector<64x8xi1> to vector<64x8xi32>
    %11 = arith.sitofp %10 : vector<64x8xi32> to vector<64x8xf32>
    %cst_5 = arith.constant dense<0.000000e+00> : vector<64x20xf32>
    %12 = tpu.matmul %11, %5, %cst_5 {dimension_numbers = #tpu.dot_dimension_numbers<[1], [0], [0], [1], [0, 0, 1, 1], [], []>} : vector<64x8xf32>, vector<8x20xf32>, vector<64x20xf32> -> vector<64x20xf32>
    %c32 = arith.constant 32 : index
    %c0_6 = arith.constant 0 : index
    %13 = vector.load %arg2[%c32, %c0_6] : memref<64x20xf32, #tpu.memory_space<vmem>>, vector<20x20xf32>
    %cst_7 = arith.constant 0.000000e+00 : f32
    %14 = vector.broadcast %cst_7 : f32 to vector<8x20xf32>
    %15 = vector.extract_strided_slice %12 {offsets = [0, 0], sizes = [8, 20], strides = [1, 1]} : vector<64x20xf32> to vector<8x20xf32>
    %cst_8 = arith.constant dense<0.000000e+00> : vector<8x20xf32>
    %16 = tpu.matmul %14, %13, %cst_8 {dimension_numbers = #tpu.dot_dimension_numbers<[1], [0], [0], [1], [0, 0, 1, 1], [], []>} : vector<8x20xf32>, vector<20x20xf32>, vector<8x20xf32> -> vector<8x20xf32>
    %17 = arith.addf %15, %16 : vector<8x20xf32>
    %18 = math.tanh %17 : vector<8x20xf32>
    %19 = vector.extract_strided_slice %12 {offsets = [8, 0], sizes = [8, 20], strides = [1, 1]} : vector<64x20xf32> to vector<8x20xf32>
    %cst_9 = arith.constant dense<0.000000e+00> : vector<8x20xf32>
    %20 = tpu.matmul %18, %13, %cst_9 {dimension_numbers = #tpu.dot_dimension_numbers<[1], [0], [0], [1], [0, 0, 1, 1], [], []>} : vector<8x20xf32>, vector<20x20xf32>, vector<8x20xf32> -> vector<8x20xf32>
    %21 = arith.addf %19, %20 : vector<8x20xf32>
    %22 = math.tanh %21 : vector<8x20xf32>
    %23 = vector.extract_strided_slice %12 {offsets = [16, 0], sizes = [8, 20], strides = [1, 1]} : vector<64x20xf32> to vector<8x20xf32>
    %cst_10 = arith.constant dense<0.000000e+00> : vector<8x20xf32>
    %24 = tpu.matmul %22, %13, %cst_10 {dimension_numbers = #tpu.dot_dimension_numbers<[1], [0], [0], [1], [0, 0, 1, 1], [], []>} : vector<8x20xf32>, vector<20x20xf32>, vector<8x20xf32> -> vector<8x20xf32>
    %25 = arith.addf %23, %24 : vector<8x20xf32>
    %26 = math.tanh %25 : vector<8x20xf32>
    %27 = vector.extract_strided_slice %12 {offsets = [24, 0], sizes = [8, 20], strides = [1, 1]} : vector<64x20xf32> to vector<8x20xf32>
    %cst_11 = arith.constant dense<0.000000e+00> : vector<8x20xf32>
    %28 = tpu.matmul %26, %13, %cst_11 {dimension_numbers = #tpu.dot_dimension_numbers<[1], [0], [0], [1], [0, 0, 1, 1], [], []>} : vector<8x20xf32>, vector<20x20xf32>, vector<8x20xf32> -> vector<8x20xf32>
    %29 = arith.addf %27, %28 : vector<8x20xf32>
    %30 = math.tanh %29 : vector<8x20xf32>
    %31 = vector.extract_strided_slice %12 {offsets = [32, 0], sizes = [8, 20], strides = [1, 1]} : vector<64x20xf32> to vector<8x20xf32>
    %cst_12 = arith.constant dense<0.000000e+00> : vector<8x20xf32>
    %32 = tpu.matmul %30, %13, %cst_12 {dimension_numbers = #tpu.dot_dimension_numbers<[1], [0], [0], [1], [0, 0, 1, 1], [], []>} : vector<8x20xf32>, vector<20x20xf32>, vector<8x20xf32> -> vector<8x20xf32>
    %33 = arith.addf %31, %32 : vector<8x20xf32>
    %34 = math.tanh %33 : vector<8x20xf32>
    %35 = vector.extract_strided_slice %12 {offsets = [40, 0], sizes = [8, 20], strides = [1, 1]} : vector<64x20xf32> to vector<8x20xf32>
    %cst_13 = arith.constant dense<0.000000e+00> : vector<8x20xf32>
    %36 = tpu.matmul %34, %13, %cst_13 {dimension_numbers = #tpu.dot_dimension_numbers<[1], [0], [0], [1], [0, 0, 1, 1], [], []>} : vector<8x20xf32>, vector<20x20xf32>, vector<8x20xf32> -> vector<8x20xf32>
    %37 = arith.addf %35, %36 : vector<8x20xf32>
    %38 = math.tanh %37 : vector<8x20xf32>
    %39 = vector.extract_strided_slice %12 {offsets = [48, 0], sizes = [8, 20], strides = [1, 1]} : vector<64x20xf32> to vector<8x20xf32>
    %cst_14 = arith.constant dense<0.000000e+00> : vector<8x20xf32>
    %40 = tpu.matmul %38, %13, %cst_14 {dimension_numbers = #tpu.dot_dimension_numbers<[1], [0], [0], [1], [0, 0, 1, 1], [], []>} : vector<8x20xf32>, vector<20x20xf32>, vector<8x20xf32> -> vector<8x20xf32>
    %41 = arith.addf %39, %40 : vector<8x20xf32>
    %42 = math.tanh %41 : vector<8x20xf32>
    %43 = vector.extract_strided_slice %12 {offsets = [56, 0], sizes = [8, 20], strides = [1, 1]} : vector<64x20xf32> to vector<8x20xf32>
    %cst_15 = arith.constant dense<0.000000e+00> : vector<8x20xf32>
    %44 = tpu.matmul %42, %13, %cst_15 {dimension_numbers = #tpu.dot_dimension_numbers<[1], [0], [0], [1], [0, 0, 1, 1], [], []>} : vector<8x20xf32>, vector<20x20xf32>, vector<8x20xf32> -> vector<8x20xf32>
    %45 = arith.addf %43, %44 : vector<8x20xf32>
    %46 = math.tanh %45 : vector<8x20xf32>
    %47 = tpu.concatenate %18, %22, %26, %30, %34, %38, %42, %46 in 0 : vector<8x20xf32>, vector<8x20xf32>, vector<8x20xf32>, vector<8x20xf32>, vector<8x20xf32>, vector<8x20xf32>, vector<8x20xf32>, vector<8x20xf32> -> vector<64x20xf32>
    %c0_16 = arith.constant 0 : index
    %c0_17 = arith.constant 0 : index
    %48 = vector.load %arg4[%c0_16, %c0_17] : memref<64x64xf32, #tpu.memory_space<vmem>>, vector<64x64xf32>
    %cst_18 = arith.constant dense<0.000000e+00> : vector<64x20xf32>
    %49 = tpu.matmul %48, %47, %cst_18 {dimension_numbers = #tpu.dot_dimension_numbers<[1], [0], [0], [1], [0, 0, 1, 1], [], []>} : vector<64x64xf32>, vector<64x20xf32>, vector<64x20xf32> -> vector<64x20xf32>
    %c0_19 = arith.constant 0 : index
    %c0_20 = arith.constant 0 : index
    %50 = vector.load %arg3[%c0_19, %c0_20] : memref<32x7xf32, #tpu.memory_space<vmem>>, vector<20x7xf32>
    %c24 = arith.constant 24 : index
    %c0_21 = arith.constant 0 : index
    %51 = vector.load %arg3[%c24, %c0_21] : memref<32x7xf32, #tpu.memory_space<vmem>>, vector<1x7xf32>
    %cst_22 = arith.constant dense<0.000000e+00> : vector<64x7xf32>
    %52 = tpu.matmul %49, %50, %cst_22 {dimension_numbers = #tpu.dot_dimension_numbers<[1], [0], [0], [1], [0, 0, 1, 1], [], []>} : vector<64x20xf32>, vector<20x7xf32>, vector<64x7xf32> -> vector<64x7xf32>
    %53 = vector.broadcast %51 : vector<1x7xf32> to vector<64x7xf32>
    %54 = arith.addf %52, %53 : vector<64x7xf32>
    %c0_23 = arith.constant 0 : index
    %c0_24 = arith.constant 0 : index
    %55 = vector.load %arg5[%c0_23, %c0_24] : memref<64x7xf32, #tpu.memory_space<vmem>>, vector<64x7xf32>
    tpu.vector_store %arg5[%c0_23, %c0_24], %54 {strides = array<i32>} : memref<64x7xf32, #tpu.memory_space<vmem>>, vector<64x7xf32>,
    return
  }
  func.func @transform_0(%arg0: i32) -> (i32, i32) {
    %c0_i32 = arith.constant 0 : i32
    %c0_i32_0 = arith.constant 0 : i32
    return %arg0, %c0_i32 : i32, i32
  }
  func.func @transform_1(%arg0: i32) -> (i32, i32) {
    %c0_i32 = arith.constant 0 : i32
    %c0_i32_0 = arith.constant 0 : i32
    %c0_i32_1 = arith.constant 0 : i32
    return %c0_i32, %c0_i32_0 : i32, i32
  }
  func.func @transform_2(%arg0: i32) -> (i32, i32) {
    %c0_i32 = arith.constant 0 : i32
    %c0_i32_0 = arith.constant 0 : i32
    %c0_i32_1 = arith.constant 0 : i32
    return %c0_i32, %c0_i32_0 : i32, i32
  }
  func.func @transform_3(%arg0: i32) -> (i32, i32) {
    %c0_i32 = arith.constant 0 : i32
    %c0_i32_0 = arith.constant 0 : i32
    %c0_i32_1 = arith.constant 0 : i32
    return %c0_i32, %c0_i32_0 : i32, i32
  }
  func.func @transform_4(%arg0: i32) -> (i32, i32) {
    %c0_i32 = arith.constant 0 : i32
    %c0_i32_0 = arith.constant 0 : i32
    return %arg0, %c0_i32 : i32, i32
  }
}

</mosaic_0001>

<bundles_post_ra>
// kernel: tpu_custom_call.1
= control target key start
LH: loop header
LB: loop body
LE: loop exit
PB: predicated region body
PF: predicated region fallthrough
CT: control target
= control target key end

     0   :  { %vm27_vm0 = vcmask 1043456   ;;  %v625_v0 = vmov 0   ;;  %vm23_vm1 = vcmask 162816   ;;  %v626_v15 = vmov 0.0   ;;  %s855_s1 = inlined_call_operand.vmem [shape: f32[64,20], index: 1, kind: input, shape index: {}]   ;;  %s856_s0 = inlined_call_operand.vmem [shape: s32[64,1], index: 0, kind: input, shape index: {}]   ;;  %s857_s2 = inlined_call_operand.vmem [shape: f32[32,7], index: 2, kind: input, shape index: {}]   ;;  %s858_s3 = inlined_call_operand.vmem [shape: f32[64,64], index: 3, kind: input, shape index: {}]   ;;  %s859_s4 = inlined_call_operand.vmem [shape: f32[64,7], index: 4, kind: output, shape index: {}]  }
   0x1   :  { %604 = vset.pattern.permute.xlu0 %v625_v0  ;;  %v20_v1 = vld [vmem:[%s855_s1 + $0x18] sm:$0xf]  ;;  %v51_v2 = vld [vmem:[%s856_s0] sm:$0xff]  ;;  %v19_v3 = vld [vmem:[%s855_s1 + $0x10] sm:$0xff]  ;;  %605 = vset.pattern.permute.xlu1 %v625_v0  ;;  %v59_v16 = vlaneseq  ;;  %vm109_vm3 = vcmask 64512   ;;  %vm389_vm11 = vcmask 523264  }
   0x2   :  { %541 = vmatpush.msk.msra.mxu0 %vm27_vm0, %v20_v1  ;;  %62 = vperm.xlu0 %604, %v51_v2   ;;  %v18_v4 = vld [vmem:[%s855_s1 + $0x8] sm:$0xff]  ;;  %v53_v5 = vld [vmem:[%s856_s0 + $0x10] sm:$0xff]  ;;  %v17_v6 = vld [vmem:[%s855_s1] sm:$0xff]  ;;  %vm528_vm12 = vcmask 56320  }
   0x3   :  { %606 = vset.pattern.permute.xlu2 %v625_v0  ;;  %68 = vperm.xlu1 %605, %v53_v5   ;;  %v55_v7 = vld [vmem:[%s856_s0 + $0x20] sm:$0xff]  ;;  %v52_v8 = vld [vmem:[%s856_s0 + $0x8] sm:$0xff]  ;;  %v54_v9 = vld [vmem:[%s856_s0 + $0x18] sm:$0xff]  ;;  %v60_v17 = vand.u32 127, %v59_v16 }
   0x4   :  { %45 = vmatpush.msra.mxu0 %v19_v3  ;;  %74 = vperm.xlu2 %606, %v55_v7   ;;  %v56_v10 = vld [vmem:[%s856_s0 + $0x28] sm:$0xff]  ;;  %v57_v11 = vld [vmem:[%s856_s0 + $0x30] sm:$0xff]  ;;  %v706_v14 = vld [vmem:[%s855_s1 + $0x20] sm:$0xff] }
   0x5   :  { %v690_v12 = vld [vmem:[%s855_s1 + $0x30] sm:$0xf]  ;;  %v701_v13 = vld [vmem:[%s855_s1 + $0x28] sm:$0xff]  ;;  %v607_v19 = vld [vmem:[%s855_s1 + $0x38] ss:$0 sm:$0xff] }
   0x6   :  { %46 = vmatpush.msra.mxu0 %v18_v4  ;;  %559 = vmatpush.msk.msra.mxu2 %vm27_vm0, %v690_v12  ;;  %v58_v28 = vld [vmem:[%s856_s0 + $0x38] sm:$0xff]  ;;  %v386_v7 = vld [vmem:[%s858_s3 + $0x28] sm:$0xff]  ;;  %v385_v16 = vld [vmem:[%s858_s3 + $0x20] sm:$0xff] }
   0x7   :  { %542 = vmatmul.msk.f32.vlgmr.msra.gmra.mxu0 %vm23_vm1, %v17_v6  ;;  %560 = vmatpush.msk.msra.mxu3 %vm27_vm0, %v690_v12  ;;  %v381_v6 = vld [vmem:[%s858_s3] sm:$0xff] }
   0x8   :  { %568 = vmatpush.msk.msrb.mxu0 %vm27_vm0, %v690_v12  ;;  %198 = vmatpush.msra.mxu2 %v701_v13 }
   0x9   :  { %223 = vmatpush.msra.mxu3 %v701_v13 }
   0xa   :  { %65 = vperm.xlu0 %604, %v52_v8   ;;  %323 = vmatpush.msrb.mxu0 %v701_v13  ;;  %v457_v8 = vld [vmem:[%s857_s2 + $0x10] sm:$0xf] }
   0xb   :  { %71 = vperm.xlu1 %605, %v54_v9   ;;  %199 = vmatpush.msra.mxu2 %v706_v14  ;;  %v456_v9 = vld [vmem:[%s857_s2 + $0x8] sm:$0xff] }
   0xc   :  { %77 = vperm.xlu2 %606, %v56_v10   ;;  %224 = vmatpush.msra.mxu3 %v706_v14  ;;  %v455_v10 = vld [vmem:[%s857_s2] sm:$0xff] }
   0xd   :  { %200 = vmatmul.f32.vlgmr.msra.gmra.mxu2 %v626_v15  ;;  %324 = vmatpush.msrb.mxu0 %v706_v14 }
   0xe   :  { %566 = vmatpush.msk.msrb.mxu3 %vm27_vm0, %v690_v12  ;;  %564 = vmatpush.msk.msrb.mxu2 %vm27_vm0, %v690_v12 }
  0x10   :  { %298 = vmatpush.msrb.mxu3 %v701_v13  ;;  %273 = vmatpush.msrb.mxu2 %v701_v13 }
  0x12   :  { %80 = vperm.xlu0 %604, %v57_v11   ;;  %299 = vmatpush.msrb.mxu3 %v706_v14  ;;  %v382_v11 = vld [vmem:[%s858_s3 + $0x8] sm:$0xff] }
  0x13   :  { %274 = vmatpush.msrb.mxu2 %v706_v14  ;;  %83 = vperm.xlu1 %605, %v58_v28  }
  0x15   :  { %570 = vmatpush.msk.msra.mxu2 %vm27_vm0, %v690_v12 }
  0x17   :  { %348 = vmatpush.msra.mxu2 %v701_v13 }
  0x19   :  { %349 = vmatpush.msra.mxu2 %v706_v14 }
  0x5e   :  { %v75_v30 = vpop.permute.xlu2 %74 }
  0x5f   :  { %vm89_vm7 = vcmp.eq.s32.totalorder %v75_v30, %v60_v17 }
  0x60   :  { %v547_v31 = vsel %vm89_vm7, 1.0, %v626_v15 }
  0x66   :  { %v78_v32 = vpop.permute.xlu2 %77 }
  0x67   :  { %vm90_vm8 = vcmp.eq.s32.totalorder %v78_v32, %v60_v17 }
  0x68   :  { %v548_v33 = vsel %vm90_vm8, 1.0, %v626_v15 }
  0x74   :  { %v63_v18 = vpop.permute.xlu0 %62 }
  0x75   :  { %vm85_vm2 = vcmp.eq.s32.totalorder %v63_v18, %v60_v17  ;;  %v69_v24 = vpop.permute.xlu1 %68 }
  0x76   :  { %v543_v21 = vsel %vm85_vm2, 1.0, %v626_v15  ;;  %vm87_vm5 = vcmp.eq.s32.totalorder %v69_v24, %v60_v17 }
  0x77   :  { %v545_v26 = vsel %vm87_vm5, 1.0, %v626_v15 }
  0x7c   :  { %v66_v23 = vpop.permute.xlu0 %65 }
  0x7d   :  { %vm86_vm4 = vcmp.eq.s32.totalorder %v66_v23, %v60_v17  ;;  %v72_v27 = vpop.permute.xlu1 %71 }
  0x7e   :  { %v544_v25 = vsel %vm86_vm4, 1.0, %v626_v15  ;;  %vm88_vm6 = vcmp.eq.s32.totalorder %v72_v27, %v60_v17 }
  0x7f   :  { %v546_v29 = vsel %vm88_vm6, 1.0, %v626_v15 }
  0x84   :  { %v48_v20 = vpop.f32.mrf.mxu0  ;;  %v81_v34 = vpop.permute.xlu0 %80 }
  0x85   :  { %v49_v22 = vadd.f32 %v607_v19, %v48_v20  ;;  %vm91_vm9 = vcmp.eq.s32.totalorder %v81_v34, %v60_v17  ;;  %v84_v40 = vpop.permute.xlu1 %83 }
  0x86   :  { %v549_v35 = vsel %vm91_vm9, 1.0, %v626_v15  ;;  %vm92_vm10 = vcmp.eq.s32.totalorder %v84_v40, %v60_v17 }
  0x87   :  { %149 = vmatpush.msra.mxu1 %v49_v22  ;;  %v550_v41 = vsel %vm92_vm10, 1.0, %v626_v15  ;;  %v384_v15 = vld [vmem:[%s858_s3 + $0x18] sm:$0xff] }
  0x88   :  { %551 = vmatmul.msk.f32.vlgmr.msra.gmra.mxu1 %vm109_vm3, %v543_v21 }
  0x89   :  { %562 = vmatpush.msk.msrb.mxu1 %vm27_vm0, %v690_v12 }
  0x8b   :  { %248 = vmatpush.msrb.mxu1 %v701_v13 }
  0x8d   :  { %249 = vmatpush.msrb.mxu1 %v706_v14 }
  0x90   :  { %552 = vmatmul.msk.f32.gmra.mxu1 %vm109_vm3, %v544_v25  ;;  %v201_v36 = vpop.f32.mrf.mxu2  ;;  %v608_v25 = vld [vmem:[%s857_s2 + $0x18] ss:$0 sm:$0xff] }
  0x98   :  { %553 = vmatmul.msk.f32.gmra.mxu1 %vm109_vm3, %v545_v26 }
  0xa0   :  { %554 = vmatmul.msk.f32.gmra.mxu1 %vm109_vm3, %v546_v29 }
  0xa8   :  { %555 = vmatmul.msk.f32.gmra.mxu1 %vm109_vm3, %v547_v31 }
  0xb0   :  { %556 = vmatmul.msk.f32.gmra.mxu1 %vm109_vm3, %v548_v33 }
  0xb8   :  { %557 = vmatmul.msk.f32.gmra.mxu1 %vm109_vm3, %v549_v35 }
  0xc0   :  { %558 = vmatmul.msk.f32.gmra.mxu1 %vm109_vm3, %v550_v41 }
 0x105   :  { %v151_v37 = vpop.f32.mrf.mxu1 }
 0x106   :  { %v204_v38 = vadd.f32 %v201_v36, %v151_v37 }
 0x108   :  { %609 = vtanh.f32 %v204_v38 }
 0x10d   :  { %v154_v42 = vpop.f32.mrf.mxu1 }
 0x10e   :  { %v751_v39 = vpop.eup %609 }
 0x10f   :  { %561 = vmatmul.msk.f32.vlgmr.msra.gmra.mxu3 %vm23_vm1, %v751_v39 }
 0x110   :  { %572 = vmatpush.msk.msra.mxu3 %vm27_vm0, %v690_v12  ;;  %v387_v12 = vld [vmem:[%s858_s3 + $0x30] sm:$0xff] }
 0x112   :  { %373 = vmatpush.msra.mxu3 %v701_v13  ;;  %v383_v13 = vld [vmem:[%s858_s3 + $0x10] sm:$0xff] }
 0x114   :  { %374 = vmatpush.msra.mxu3 %v706_v14  ;;  %v388_v14 = vld [vmem:[%s858_s3 + $0x38] sm:$0xff] }
 0x115   :  { %v157_v46 = vpop.f32.mrf.mxu1 }
 0x11d   :  { %v160_v47 = vpop.f32.mrf.mxu1 }
 0x125   :  { %v163_v48 = vpop.f32.mrf.mxu1 }
 0x12d   :  { %v166_v49 = vpop.f32.mrf.mxu1 }
 0x135   :  { %v169_v50 = vpop.f32.mrf.mxu1 }
 0x13d   :  { %v172_v51 = vpop.f32.mrf.mxu1 }
 0x192   :  { %v226_v43 = vpop.f32.mrf.mxu3 }
 0x193   :  { %v229_v44 = vadd.f32 %v226_v43, %v154_v42 }
 0x195   :  { %611 = vtanh.f32 %v229_v44 }
 0x19b   :  { %v612_v45 = vpop.eup %611 }
 0x19c   :  { %563 = vmatmul.msk.f32.vlgmr.msrb.gmra.mxu1 %vm23_vm1, %v612_v45 }
 0x219   :  { %v251_v52 = vpop.f32.mrf.mxu1 }
 0x21a   :  { %v254_v53 = vadd.f32 %v251_v52, %v157_v46 }
 0x21c   :  { %613 = vtanh.f32 %v254_v53 }
 0x222   :  { %v614_v54 = vpop.eup %613 }
 0x223   :  { %565 = vmatmul.msk.f32.vlgmr.msrb.gmra.mxu2 %vm23_vm1, %v614_v54 }
 0x224   :  { %582 = vmatpush.msk.msrb.mxu2 %vm27_vm0, %v457_v8 }
 0x226   :  { %501 = vmatpush.msrb.mxu2 %v456_v9 }
 0x228   :  { %502 = vmatpush.msrb.mxu2 %v455_v10 }
 0x2a6   :  { %v276_v55 = vpop.f32.mrf.mxu2 }
 0x2a7   :  { %v279_v56 = vadd.f32 %v276_v55, %v160_v47 }
 0x2a9   :  { %615 = vtanh.f32 %v279_v56 }
 0x2af   :  { %v616_v57 = vpop.eup %615 }
 0x2b0   :  { %567 = vmatmul.msk.f32.vlgmr.msrb.gmra.mxu3 %vm23_vm1, %v616_v57 }
 0x333   :  { %v301_v58 = vpop.f32.mrf.mxu3 }
 0x334   :  { %v304_v59 = vadd.f32 %v301_v58, %v163_v48 }
 0x336   :  { %617 = vtanh.f32 %v304_v59 }
 0x33c   :  { %v618_v60 = vpop.eup %617 }
 0x33d   :  { %569 = vmatmul.msk.f32.vlgmr.msrb.gmra.mxu0 %vm23_vm1, %v618_v60 }
 0x3ba   :  { %v326_v61 = vpop.f32.mrf.mxu0 }
 0x3bb   :  { %v329_v62 = vadd.f32 %v326_v61, %v166_v49 }
 0x3bd   :  { %619 = vtanh.f32 %v329_v62 }
 0x3c3   :  { %v620_v63 = vpop.eup %619 }
 0x3c4   :  { %571 = vmatmul.msk.f32.vlgmr.msra.gmra.mxu2 %vm23_vm1, %v620_v63 }
 0x447   :  { %v351_v0 = vpop.f32.mrf.mxu2 }
 0x448   :  { %v354_v1 = vadd.f32 %v351_v0, %v169_v50 }
 0x44a   :  { %621 = vtanh.f32 %v354_v1 }
 0x450   :  { %v622_v2 = vpop.eup %621 }
 0x451   :  { %573 = vmatmul.msk.f32.vlgmr.msra.gmra.mxu3 %vm23_vm1, %v622_v2 }
 0x4d4   :  { %v376_v3 = vpop.f32.mrf.mxu3 }
 0x4d5   :  { %v379_v4 = vadd.f32 %v376_v3, %v172_v51 }
 0x4d7   :  { %623 = vtanh.f32 %v379_v4 }
 0x4dd   :  { %v624_v5 = vpop.eup %623 }
 0x4de   :  { %422 = vmatpush.msra.mxu0 %v624_v5  ;;  %591 = vmatpush.msrb.mxu3 %v624_v5 }
 0x4e0   :  { %423 = vmatpush.msra.mxu0 %v622_v2  ;;  %592 = vmatpush.msrb.mxu3 %v622_v2 }
 0x4e2   :  { %424 = vmatpush.msra.mxu0 %v620_v63  ;;  %593 = vmatpush.msrb.mxu3 %v620_v63 }
 0x4e4   :  { %425 = vmatpush.msra.mxu0 %v618_v60  ;;  %594 = vmatpush.msrb.mxu3 %v618_v60 }
 0x4e6   :  { %426 = vmatpush.msra.mxu0 %v616_v57  ;;  %595 = vmatpush.msrb.mxu3 %v616_v57 }
 0x4e8   :  { %427 = vmatpush.msra.mxu0 %v614_v54  ;;  %596 = vmatpush.msrb.mxu3 %v614_v54 }
 0x4ea   :  { %428 = vmatpush.msra.mxu0 %v612_v45  ;;  %597 = vmatpush.msrb.mxu3 %v612_v45 }
 0x4ec   :  { %429 = vmatpush.msra.mxu0 %v751_v39  ;;  %598 = vmatpush.msrb.mxu3 %v751_v39 }
 0x4ed   :  { %574 = vmatmul.msk.f32.vlgmr.msra.gmra.mxu0 %vm389_vm11, %v381_v6  ;;  %579 = vmatmul.msk.f32.vlgmr.msrb.gmra.mxu3 %vm389_vm11, %v386_v7 }
 0x4ee   :  { %599 = vmatpush.msk.msra.mxu3 %vm27_vm0, %v457_v8 }
 0x4f0   :  { %600 = vmatpush.msra.mxu3 %v456_v9 }
 0x4f2   :  { %601 = vmatpush.msra.mxu3 %v455_v10 }
 0x4f5   :  { %575 = vmatmul.msk.f32.gmra.mxu0 %vm389_vm11, %v382_v11  ;;  %580 = vmatmul.msk.f32.gmra.mxu3 %vm389_vm11, %v387_v12 }
 0x4fd   :  { %576 = vmatmul.msk.f32.gmra.mxu0 %vm389_vm11, %v383_v13  ;;  %581 = vmatmul.msk.f32.gmra.mxu3 %vm389_vm11, %v388_v14 }
 0x505   :  { %577 = vmatmul.msk.f32.gmra.mxu0 %vm389_vm11, %v384_v15 }
 0x50d   :  { %578 = vmatmul.msk.f32.gmra.mxu0 %vm389_vm11, %v385_v16 }
 0x56a   :  { %v431_v17 = vpop.f32.mrf.mxu0 }
 0x56b   :  { %583 = vmatmul.msk.f32.vlgmr.msrb.gmra.mxu2 %vm23_vm1, %v431_v17 }
 0x570   :  { %v446_v18 = vpop.f32.mrf.mxu3 }
 0x572   :  { %v434_v19 = vpop.f32.mrf.mxu0 }
 0x573   :  { %584 = vmatmul.msk.f32.gmra.mxu2 %vm23_vm1, %v434_v19 }
 0x578   :  { %v449_v20 = vpop.f32.mrf.mxu3 }
 0x579   :  { %589 = vmatmul.msk.f32.vlgmr.msra.gmra.mxu3 %vm23_vm1, %v449_v20 }
 0x57a   :  { %v437_v21 = vpop.f32.mrf.mxu0 }
 0x57b   :  { %585 = vmatmul.msk.f32.gmra.mxu2 %vm23_vm1, %v437_v21 }
 0x580   :  { %v452_v22 = vpop.f32.mrf.mxu3 }
 0x581   :  { %590 = vmatmul.msk.f32.gmra.mxu3 %vm23_vm1, %v452_v22 }
 0x582   :  { %v440_v23 = vpop.f32.mrf.mxu0 }
 0x583   :  { %586 = vmatmul.msk.f32.gmra.mxu2 %vm23_vm1, %v440_v23 }
 0x58a   :  { %v443_v24 = vpop.f32.mrf.mxu0 }
 0x58b   :  { %587 = vmatmul.msk.f32.gmra.mxu2 %vm23_vm1, %v443_v24 }
 0x593   :  { %588 = vmatmul.msk.f32.gmra.mxu2 %vm23_vm1, %v446_v18 }
 0x5ee   :  { %v504_v26 = vpop.f32.mrf.mxu2 }
 0x5ef   :  { %v505_v27 = vadd.f32 %v608_v25, %v504_v26 }
 0x5f1   :  { %529 = vst.msk [vmem:[%s859_s4] sm:$0xff] %vm528_vm12, %v505_v27 }
 0x5f6   :  { %v507_v28 = vpop.f32.mrf.mxu2 }
 0x5f7   :  { %v508_v29 = vadd.f32 %v608_v25, %v507_v28 }
 0x5f9   :  { %530 = vst.msk [vmem:[%s859_s4 + $0x8] sm:$0xff] %vm528_vm12, %v508_v29 }
 0x5fc   :  { %v522_v30 = vpop.f32.mrf.mxu3 }
 0x5fd   :  { %v523_v31 = vadd.f32 %v608_v25, %v522_v30 }
 0x5fe   :  { %v510_v32 = vpop.f32.mrf.mxu2 }
 0x5ff   :  { %v511_v33 = vadd.f32 %v608_v25, %v510_v32  ;;  %535 = vst.msk [vmem:[%s859_s4 + $0x30] sm:$0xff] %vm528_vm12, %v523_v31 }
 0x601   :  { %531 = vst.msk [vmem:[%s859_s4 + $0x10] sm:$0xff] %vm528_vm12, %v511_v33 }
 0x604   :  { %v525_v34 = vpop.f32.mrf.mxu3 }
 0x605   :  { %v526_v35 = vadd.f32 %v608_v25, %v525_v34 }
 0x606   :  { %v513_v36 = vpop.f32.mrf.mxu2 }
 0x607   :  { %v514_v37 = vadd.f32 %v608_v25, %v513_v36  ;;  %536 = vst.msk [vmem:[%s859_s4 + $0x38] sm:$0xff] %vm528_vm12, %v526_v35 }
 0x609   :  { %532 = vst.msk [vmem:[%s859_s4 + $0x18] sm:$0xff] %vm528_vm12, %v514_v37 }
 0x60e   :  { %v516_v38 = vpop.f32.mrf.mxu2 }
 0x60f   :  { %v517_v39 = vadd.f32 %v608_v25, %v516_v38 }
 0x611   :  { %533 = vst.msk [vmem:[%s859_s4 + $0x20] sm:$0xff] %vm528_vm12, %v517_v39 }
 0x616   :  { %v519_v40 = vpop.f32.mrf.mxu2 }
 0x617   :  { %v520_v41 = vadd.f32 %v608_v25, %v519_v40 }
 0x619   :  { %534 = vst.msk [vmem:[%s859_s4 + $0x28] sm:$0xff] %vm528_vm12, %v520_v41 }

</bundles_post_ra>
